<compile_context>
chip_gen: v7x
topology: tpu7x:2x2x1
jax: 0.10.0
libtpu: 0.0.40
codegen_flags: <defaults>
</compile_context>

<pallas_src>
import math

import jax
import jax.numpy as jnp
from jax.experimental import pallas as pl
from jax.experimental.pallas import tpu as pltpu

_LANE = 128


def _sublane_rows(dtype):
    """Sublane packing height: 8 for f32, 16 for bf16, 32 for int8/fp8."""
    return max(8, 32 // jnp.dtype(dtype).itemsize)


def _vmem_policy():
    """Return (double-buffer budget bytes, vmem_limit_bytes) per generation."""
    phys = 64 << 20                      # conservative default = v7x (64 MiB)
    try:
        info = pltpu.get_tpu_info()
        v = getattr(info, "vmem_capacity_bytes", None)
        if v:
            phys = int(v)
    except Exception:
        pass
    if phys <= (64 << 20):               # v7x-class TensorCore
        return 24 << 20, 32 << 20
    return 48 << 20, 64 << 20            # v5e / v6e (128 MiB physical VMEM)


def _choose_tile_rows(rows_k, row_bytes, sub, *, target_tile_bytes,
                      budget_bytes, min_blocks=4):
    """Row-tile height TM: multiple of `sub`, ~target_tile_bytes per buffer,
    double-buffered x+out within `budget_bytes`, and small enough that the
    grid keeps >= min_blocks (else >= 2) steps when the row count permits."""
    if rows_k <= sub:
        return rows_k                                   # tiny: one full block
    cap = min(budget_bytes // (4 * row_bytes),          # 2 bufs x (in + out)
              max(1, target_tile_bytes // row_bytes))
    cap = max(sub, (cap // sub) * sub)
    cap = min(cap, max(sub, (rows_k // sub) * sub))     # never exceed array
    for mb in (min_blocks, 2):                          # keep grid length >= mb
        per_blk = (rows_k // (mb * sub)) * sub
        if per_blk >= sub:
            cap = min(cap, per_blk)
            break
    return cap


def _make_aff_kernel(reps):
    """reps = TM // param_rows, static per pallas_call."""
    if reps == 1:
        def kernel(x_ref, a_ref, b_ref, o_ref):
            o_ref[...] = x_ref[...] * a_ref[...] + b_ref[...]
    else:
        def kernel(x_ref, a_ref, b_ref, o_ref):
            tm, lanes = x_ref.shape
            sub = tm // reps
            # Free sublane-major split; broadcast over the leading dim is
            # plain vreg replication (no per-step sublane/XLU broadcast).
            x3 = x_ref[...].reshape(reps, sub, lanes)
            o_ref[...] = (x3 * a_ref[...] + b_ref[...]).reshape(tm, lanes)
    return kernel


def aff(x, alpha, beta):
    """Aff forward: x * alpha + beta.  x: (B, N, D); alpha/beta: (1, 1, D)."""
    B, N, D = x.shape
    dtype = x.dtype
    itemsize = jnp.dtype(dtype).itemsize
    rows = B * N

    # NOTE: alpha/beta are cast to x.dtype before the FMA; for bf16 x this is
    # slightly lower precision than torch's implicit f32 promotion.
    alpha_vec = alpha.reshape(D).astype(dtype)
    beta_vec = beta.reshape(D).astype(dtype)

    # Lane folding so the last dim is a multiple of 128 (unmasked stores).
    k = 1 if D % _LANE == 0 else _LANE // math.gcd(D, _LANE)
    pad_rows = (-rows) % k

    x2d = x.reshape(rows, D)
    if pad_rows:
        x2d = jnp.pad(x2d, ((0, pad_rows), (0, 0)))
    rows_p = rows + pad_rows
    rows_k = rows_p // k
    L = k * D
    x2d = x2d.reshape(rows_k, L)
    row_bytes = L * itemsize

    sub = _sublane_rows(dtype)
    budget_bytes, vmem_limit = _vmem_policy()
    tm = _choose_tile_rows(rows_k, row_bytes, sub,
                           target_tile_bytes=4 << 20,
                           budget_bytes=budget_bytes)
    grid = (pl.cdiv(rows_k, tm),)

    # alpha/beta as full-sublane-height blocks, VMEM-resident (constant map).
    param_rows = sub if (tm >= sub and tm % sub == 0) else tm
    reps = tm // param_rows
    alpha2d = jnp.tile(jnp.tile(alpha_vec, k)[None, :], (param_rows, 1))
    beta2d = jnp.tile(jnp.tile(beta_vec, k)[None, :], (param_rows, 1))

    out2d = pl.pallas_call(
        _make_aff_kernel(reps),
        out_shape=jax.ShapeDtypeStruct((rows_k, L), dtype),
        grid_spec=pltpu.PrefetchScalarGridSpec(
            num_scalar_prefetch=0,
            grid=grid,
            in_specs=[
                pl.BlockSpec((tm, L), lambda i: (i, 0)),
                pl.BlockSpec((param_rows, L), lambda i: (0, 0)),
                pl.BlockSpec((param_rows, L), lambda i: (0, 0)),
            ],
            out_specs=pl.BlockSpec((tm, L), lambda i: (i, 0)),
        ),
        compiler_params=pltpu.CompilerParams(
            dimension_semantics=("parallel",),
            vmem_limit_bytes=vmem_limit,
        ),
    )(x2d, alpha2d, beta2d)

    out = out2d.reshape(rows_p, D)
    if pad_rows:
        out = out[:rows]
    return out.reshape(B, N, D)


def _check(B, N, D, dtype, key, tol):
    kx, ka, kb = jax.random.split(key, 3)
    x = jax.random.normal(kx, (B, N, D), jnp.float32).astype(dtype)
    alpha = (jnp.ones((1, 1, D), jnp.float32)
             + 0.1 * jax.random.normal(ka, (1, 1, D), jnp.float32))
    beta = 0.1 * jax.random.normal(kb, (1, 1, D), jnp.float32)
    out = jax.block_until_ready(aff(x, alpha, beta))
    ref = x * alpha.astype(dtype) + beta.astype(dtype)
    assert out.shape == x.shape, (out.shape, x.shape)
    assert out.dtype == x.dtype, (out.dtype, x.dtype)
    assert jnp.allclose(out, ref, atol=tol, rtol=tol), (B, N, D, str(dtype))


if __name__ == "__main__":
    key = jax.random.PRNGKey(0)
    keys = jax.random.split(key, 4)
    # Primary small demo shape implied by the module: (batch=2, seq=8, dim=32).
    _check(2, 8, 32, jnp.float32, keys[0], 1e-6)
    # D % 128 != 0 with a partial last row-block (rows_k % TM != 0).
    _check(2, 100, 48, jnp.float32, keys[1], 1e-6)
    # rows % k != 0 -> row-padding path.
    _check(2, 9, 24, jnp.float32, keys[2], 1e-6)
    # bf16: sublane packing 16, lane-aligned D, reps > 1 broadcast path.
    _check(2, 64, 128, jnp.bfloat16, keys[3], 2e-2)
    print("KERNEL_OK")
</pallas_src>

<mosaic_0001>
module attributes {stable_mosaic.version = 11 : i64} {
  func.func @kernel(%arg0: i32, %arg1: memref<4x128xf32, #tpu.memory_space<vmem>>, %arg2: memref<4x128xf32, #tpu.memory_space<vmem>>, %arg3: memref<4x128xf32, #tpu.memory_space<vmem>>, %arg4: memref<4x128xf32, #tpu.memory_space<vmem>>) attributes {dimension_semantics = [#tpu.dimension_semantics<parallel>], iteration_bounds = array<i64: 1>, scalar_prefetch = 0 : i64, scratch_operands = 0 : i64, tpu.core_type = #tpu.core_type<tc>, window_params = [{transform_indices = @transform_0, window_bounds = array<i64: 4, 128>}, {pipeline_mode = #tpu.pipeline_mode<synchronous>, transform_indices = @transform_1, window_bounds = array<i64: 4, 128>}, {pipeline_mode = #tpu.pipeline_mode<synchronous>, transform_indices = @transform_2, window_bounds = array<i64: 4, 128>}, {transform_indices = @transform_3, window_bounds = array<i64: 4, 128>}]} {
    %c0 = arith.constant 0 : index
    %c0_0 = arith.constant 0 : index
    %0 = vector.load %arg1[%c0, %c0_0] : memref<4x128xf32, #tpu.memory_space<vmem>>, vector<4x128xf32>
    %c0_1 = arith.constant 0 : index
    %c0_2 = arith.constant 0 : index
    %1 = vector.load %arg2[%c0_1, %c0_2] : memref<4x128xf32, #tpu.memory_space<vmem>>, vector<4x128xf32>
    %2 = arith.mulf %0, %1 : vector<4x128xf32>
    %c0_3 = arith.constant 0 : index
    %c0_4 = arith.constant 0 : index
    %3 = vector.load %arg3[%c0_3, %c0_4] : memref<4x128xf32, #tpu.memory_space<vmem>>, vector<4x128xf32>
    %4 = arith.addf %2, %3 : vector<4x128xf32>
    %c0_5 = arith.constant 0 : index
    %c0_6 = arith.constant 0 : index
    %5 = vector.load %arg4[%c0_5, %c0_6] : memref<4x128xf32, #tpu.memory_space<vmem>>, vector<4x128xf32>
    tpu.vector_store %arg4[%c0_5, %c0_6], %4 {strides = array<i32>} : memref<4x128xf32, #tpu.memory_space<vmem>>, vector<4x128xf32>,
    return
  }
  func.func @transform_0(%arg0: i32) -> (i32, i32) {
    %c0_i32 = arith.constant 0 : i32
    %c0_i32_0 = arith.constant 0 : i32
    return %arg0, %c0_i32 : i32, i32
  }
  func.func @transform_1(%arg0: i32) -> (i32, i32) {
    %c0_i32 = arith.constant 0 : i32
    %c0_i32_0 = arith.constant 0 : i32
    %c0_i32_1 = arith.constant 0 : i32
    return %c0_i32, %c0_i32_0 : i32, i32
  }
  func.func @transform_2(%arg0: i32) -> (i32, i32) {
    %c0_i32 = arith.constant 0 : i32
    %c0_i32_0 = arith.constant 0 : i32
    %c0_i32_1 = arith.constant 0 : i32
    return %c0_i32, %c0_i32_0 : i32, i32
  }
  func.func @transform_3(%arg0: i32) -> (i32, i32) {
    %c0_i32 = arith.constant 0 : i32
    %c0_i32_0 = arith.constant 0 : i32
    return %arg0, %c0_i32 : i32, i32
  }
}

</mosaic_0001>

<bundles_post_ra>
// kernel: tpu_custom_call.1
= control target key start
LH: loop header
LB: loop body
LE: loop exit
PB: predicated region body
PF: predicated region fallthrough
CT: control target
= control target key end

     0   :  { %8 = vsyncpa [#allocation3], 0  ;;  %s198_s0 = inlined_call_operand.hbm [shape: f32[4,128], index: 0, kind: input, shape index: {}]   ;;  %s199_s1 = inlined_call_operand.hbm [shape: f32[4,128], index: 1, kind: input, shape index: {}]   ;;  %s200_s2 = inlined_call_operand.vmem [shape: f32[4,128], index: 2, kind: input, shape index: {}]   ;;  %s201_s3 = inlined_call_operand.hbm [shape: f32[4,128], index: 3, kind: output, shape index: {}]  }
   0x1   :  { %9 = vsyncpa [#allocation6], 0 }
   0x2   :  { %10 = vsyncpa [#allocation4], 0  ;;  %s136_s12 = smov [#allocation2]   ;;  %s137_s14 = smov [#allocation5]  }
   0x3   :  { %s17_s13 = sshll.u32 %s136_s12, 4  ;;  %s27_s15 = sshll.u32 %s137_s14, 4  ;;  %s18_s13 = int_to_ptr.vmem [resolvable:$true] %s17_s13  ;;  %s28_s15 = int_to_ptr.vmem [resolvable:$true] %s27_s15 }
   0x4   :  { %s64_s18 = scalar_lea.hbm %s198_s0, 64 }
   0x5   :  { %p65_p0 = scmp.ne.s32.totalorder %s198_s0, %s64_s18  ;;  %p68_p1 = scmp.lt.u32.totalorder %s64_s18, %s198_s0 }
   0x7   :  { %p70_p2 = pnand %p68_p1, %p65_p0 }
   0x9   :  { %73 = shalt.err (!%p70_p2)
}
   0xa   :  { %s74_s23 = scalar_lea.vmem %s18_s13, 64  ;;  %p79_p4 = scmp.lt.s32.totalorder %s18_s13, %s18_s13 }
   0xb   :  { %p75_p3 = scmp.ne.s32.totalorder %s18_s13, %s74_s23  ;;  %p80_p5 = scmp.lt.s32.totalorder %s74_s23, %s74_s23 }
   0xd   :  { %p81_p6 = por %p80_p5, %p79_p4 }
   0xf   :  { %p82_p7 = pnand %p81_p6, %p75_p3 }
  0x11   :  { %85 = shalt.err (!%p82_p7)
}
  0x12   :  { %20 = dma.hbm_to_vmem [thread:$0]  %s198_s0, 64, %s18_s13, [#allocation3]  }
  0x13   :  { %s86_s28 = scalar_lea.hbm %s199_s1, 64 }
  0x14   :  { %p87_p8 = scmp.ne.s32.totalorder %s199_s1, %s86_s28  ;;  %p90_p9 = scmp.lt.u32.totalorder %s86_s28, %s199_s1 }
  0x16   :  { %p92_p10 = pnand %p90_p9, %p87_p8 }
  0x18   :  { %95 = shalt.err (!%p92_p10)
}
  0x19   :  { %s96_s6 = scalar_lea.vmem %s28_s15, 64  ;;  %p101_p12 = scmp.lt.s32.totalorder %s28_s15, %s28_s15 }
  0x1a   :  { %p97_p11 = scmp.ne.s32.totalorder %s28_s15, %s96_s6  ;;  %p102_p13 = scmp.lt.s32.totalorder %s96_s6, %s96_s6 }
  0x1c   :  { %p103_p0 = por %p102_p13, %p101_p12 }
  0x1e   :  { %p104_p1 = pnand %p103_p0, %p97_p11 }
  0x20   :  { %107 = shalt.err (!%p104_p1)
}
  0x21   :  { %30 = dma.hbm_to_vmem [thread:$0]  %s199_s1, 64, %s28_s15, [#allocation6]  }
  0x22   :  { %130 = dma.done.wait [#allocation3], 64  }
  0x23   :  { %131 = vsyncadd [#allocation3], 4294967232 }
  0x24   :  { %132 = dma.done.wait [#allocation6], 64  }
  0x25   :  { %133 = vsyncadd [#allocation6], 4294967232  ;;  %s138_s8 = smov [#allocation7]   ;;  %v39_v0 = vld [vmem:[#allocation2] sm:$0xf] }
  0x26   :  { %s51_s9 = sshll.u32 %s138_s8, 4  ;;  %v40_v1 = vld [vmem:[#allocation5] sm:$0xf]  ;;  %v42_v2 = vld [vmem:[%s200_s2] sm:$0xf]  ;;  %s52_s9 = int_to_ptr.vmem [resolvable:$true] %s51_s9 }
  0x27   :  { %v41_v3 = vmul.f32 %v40_v1, %v39_v0  ;;  %s108_s12 = scalar_lea.vmem %s52_s9, 64  ;;  %p113_p3 = scmp.lt.s32.totalorder %s52_s9, %s52_s9 }
  0x28   :  { %p109_p2 = scmp.ne.s32.totalorder %s52_s9, %s108_s12  ;;  %p114_p4 = scmp.lt.s32.totalorder %s108_s12, %s108_s12 }
  0x29   :  { %v43_v4 = vadd.f32 %v42_v2, %v41_v3 }
  0x2a   :  { %p115_p5 = por %p114_p4, %p113_p3 }
  0x2b   :  { %44 = vst [vmem:[#allocation7] sm:$0xf] %v43_v4 }
  0x2c   :  { %p116_p6 = pnand %p115_p5, %p109_p2 }
  0x2e   :  { %119 = shalt.err (!%p116_p6)
}
  0x2f   :  { %s120_s14 = scalar_lea.hbm %s201_s3, 64 }
  0x30   :  { %p121_p7 = scmp.ne.s32.totalorder %s201_s3, %s120_s14  ;;  %p124_p8 = scmp.lt.u32.totalorder %s120_s14, %s201_s3 }
  0x32   :  { %p126_p9 = pnand %p124_p8, %p121_p7 }
  0x34   :  { %129 = shalt.err (!%p126_p9)
}
  0x35   :  { %54 = dma.vmem_to_hbm [thread:$0]  %s52_s9, 64, %s201_s3, [#allocation4]  }
  0x36   :  { %134 = dma.done.wait [#allocation4], 64  }
  0x37   :  { %135 = vsyncadd [#allocation4], 4294967232 }
  0x38   :  { %58 = vsyncpa [#allocation3], 1 }
  0x39   :  { %59 = vsyncpa [#allocation6], 1 }
  0x3a   :  { %60 = vsyncpa [#allocation4], 1 }

</bundles_post_ra>
